<compile_context>
chip_gen: v5e
topology: v5e:2x2
jax: 0.10.0
libtpu: 0.0.40
codegen_flags: <defaults>
</compile_context>

<pallas_src>
import jax
import jax.numpy as jnp
import numpy as np
from jax.experimental import pallas as pl
from jax.experimental.pallas import tpu as pltpu


def _round_up(v, m):
    return -(-v // m) * m


def _vmem_capacity_bytes():
    try:
        info = pltpu.get_tpu_info()
        return int(getattr(info, "vmem_capacity_bytes", 64 << 20))
    except Exception:
        return 64 << 20  # conservative (v7x-sized) fallback


# -----------------------------------------------------------------------------
# Kernels
# -----------------------------------------------------------------------------
def _linear_kernel_f32_out(x_ref, w_ref, b_ref, o_ref):
    # x_ref: (tm, tk), w_ref: (tk, tn) [already (Cin, Cout) layout],
    # b_ref: (1, tn), o_ref: (tm, tn) f32, resident across the K grid axis.
    k = pl.program_id(2)

    @pl.when(k == 0)
    def _():
        o_ref[...] = jnp.zeros_like(o_ref)

    o_ref[...] += jnp.dot(x_ref[...], w_ref[...],
                          preferred_element_type=jnp.float32)

    @pl.when(k == pl.num_programs(2) - 1)
    def _():
        o_ref[...] += b_ref[...]


def _linear_kernel_lowp_out(x_ref, w_ref, b_ref, o_ref, acc_ref):
    # Same as above but with an f32 VMEM scratch accumulator for non-f32 outputs.
    k = pl.program_id(2)

    @pl.when(k == 0)
    def _():
        acc_ref[...] = jnp.zeros_like(acc_ref)

    acc_ref[...] += jnp.dot(x_ref[...], w_ref[...],
                            preferred_element_type=jnp.float32)

    @pl.when(k == pl.num_programs(2) - 1)
    def _():
        o_ref[...] = (acc_ref[...] + b_ref[...]).astype(o_ref.dtype)


# -----------------------------------------------------------------------------
# One-time parameter preparation (hoisted out of the per-call forward)
# -----------------------------------------------------------------------------
def prepare_linear_params(weight, bias, *, tn=512, tk=None, compute_dtype=None):
    """weight: (Cout, Cin) PyTorch layout; bias: (Cout,).

    Transposes the weight once to (Cin, Cout), optionally casts it to
    `compute_dtype` (e.g. bf16 for the MXU), zero-pads Cin (reduction axis,
    required for correctness) and Cout to tile multiples, and pads the bias.
    """
    Cout, Cin = weight.shape

    vmem_cap = _vmem_capacity_bytes()
    if tk is None:
        # v5e/v6e (128 MiB VMEM) tolerate a deeper K tile than v7x (64 MiB).
        tk = 2048 if vmem_cap >= (100 << 20) else 1024

    tn_ = min(tn, _round_up(Cout, 128))
    tk_ = min(tk, _round_up(Cin, 128))
    Coutp = _round_up(Cout, tn_)
    Cinp = _round_up(Cin, tk_)

    w = weight.T  # (Cin, Cout): NT contraction removed, amortized one-time cost.
    if compute_dtype is not None:
        w = w.astype(compute_dtype)
    if (Cinp, Coutp) != (Cin, Cout):
        w = jnp.pad(w, ((0, Cinp - Cin), (0, Coutp - Cout)))

    b = bias.astype(jnp.float32).reshape(1, Cout)
    if Coutp != Cout:
        b = jnp.pad(b, ((0, 0), (0, Coutp - Cout)))

    return dict(w=w, b=b, Cin=Cin, Cout=Cout, tn=tn_, tk=tk_,
                compute_dtype=compute_dtype)


# -----------------------------------------------------------------------------
# Forward pass: y = x @ weight.T + bias (nn.Linear semantics)
# -----------------------------------------------------------------------------
def mlp_forward(x, params, *, tm=512):
    B, Cin = x.shape
    assert Cin == params["Cin"], "in_features mismatch"

    w, b = params["w"], params["b"]
    Cinp, Coutp = w.shape
    tn_, tk_ = params["tn"], params["tk"]
    compute_dtype = params["compute_dtype"]
    out_dtype = x.dtype

    in_dtype = compute_dtype if compute_dtype is not None else x.dtype
    # bf16 packs 16 rows per sublane group; f32 packs 8.
    sublane = 8 if np.dtype(in_dtype).itemsize >= 4 else 16
    tm_ = min(tm, _round_up(B, sublane))
    Bp = _round_up(B, tm_)

    xp = x if x.dtype == in_dtype else x.astype(in_dtype)  # single wrapper cast
    if (Bp, Cinp) != xp.shape:
        xp = jnp.pad(xp, ((0, Bp - B), (0, Cinp - Cin)))

    # Megacore (v7x has 2 TCs): keep the parallel grid extent >= 2 if possible.
    if (Bp // tm_) * (Coutp // tn_) < 2:
        while tn_ >= 256 and tn_ % 256 == 0 and Coutp // tn_ < 2:
            tn_ //= 2

    grid = (Bp // tm_, Coutp // tn_, Cinp // tk_)

    if out_dtype == jnp.float32:
        kernel = _linear_kernel_f32_out
        scratch_shapes = []
    else:
        kernel = _linear_kernel_lowp_out
        scratch_shapes = [pltpu.VMEM((tm_, tn_), jnp.float32)]

    vmem_limit = int(min(_vmem_capacity_bytes() * 3 // 4, 96 << 20))

    out = pl.pallas_call(
        kernel,
        out_shape=jax.ShapeDtypeStruct((Bp, Coutp), out_dtype),
        grid_spec=pltpu.PrefetchScalarGridSpec(
            num_scalar_prefetch=0,
            grid=grid,
            in_specs=[
                pl.BlockSpec((tm_, tk_), lambda i, j, k: (i, k)),  # x tile
                pl.BlockSpec((tk_, tn_), lambda i, j, k: (k, j)),  # w tile (Cin, Cout)
                pl.BlockSpec((1, tn_), lambda i, j, k: (0, j)),    # bias tile
            ],
            out_specs=pl.BlockSpec((tm_, tn_), lambda i, j, k: (i, j)),
            scratch_shapes=scratch_shapes,
        ),
        compiler_params=pltpu.CompilerParams(
            dimension_semantics=("parallel", "parallel", "arbitrary"),
            vmem_limit_bytes=vmem_limit,
        ),
    )(xp, w, b)

    if (Bp, Coutp) != (B, params["Cout"]):
        out = out[:B, :params["Cout"]]
    return out


if __name__ == "__main__":
    key = jax.random.PRNGKey(0)

    def make_linear(k, cin, cout, dtype=jnp.float32):
        kw, kb = jax.random.split(k)
        bound = 1.0 / (cin ** 0.5)
        w = jax.random.uniform(kw, (cout, cin), minval=-bound, maxval=bound,
                               dtype=dtype)
        b = jax.random.uniform(kb, (cout,), minval=-bound, maxval=bound,
                               dtype=dtype)
        return w, b

    k0, k1, k2, k3 = jax.random.split(key, 4)

    # 1) Small shape matching MLP(in_channels=32, out_channels=64), f32.
    batch, cin, cout = 8, 32, 64
    x = jax.random.normal(k0, (batch, cin), dtype=jnp.float32)
    weight, bias = make_linear(k1, cin, cout)
    params = prepare_linear_params(weight, bias)  # one-time transpose + pad
    y = mlp_forward(x, params)
    jax.block_until_ready(y)
    y_ref = x @ weight.T + bias
    assert y.shape == (batch, cout)
    assert jnp.allclose(y, y_ref, atol=1e-5, rtol=1e-5)

    # 2) Multi-tile grid (exercises i/j/k tiling + padding), still small.
    batch2, cin2, cout2 = 48, 600, 384
    x2 = jax.random.normal(k2, (batch2, cin2), dtype=jnp.float32)
    w2, b2 = make_linear(k3, cin2, cout2)
    params2 = prepare_linear_params(w2, b2, tn=128, tk=256)
    y2 = mlp_forward(x2, params2, tm=16)
    jax.block_until_ready(y2)
    y2_ref = x2 @ w2.T + b2
    assert jnp.allclose(y2, y2_ref, atol=1e-4, rtol=1e-4)

    # 3) bf16 MXU path (weight stored bf16 once, f32 accumulation). Precision
    #    trade-off: looser tolerance vs. the f32 reference.
    params_bf16 = prepare_linear_params(weight, bias, compute_dtype=jnp.bfloat16)
    y3 = mlp_forward(x, params_bf16)
    jax.block_until_ready(y3)
    assert jnp.allclose(y3, y_ref, atol=5e-2, rtol=5e-2)

    print("KERNEL_OK")
</pallas_src>

<mosaic_0001>
module attributes {stable_mosaic.version = 11 : i64} {
  func.func @_linear_kernel_f32_out(%arg0: i32, %arg1: i32, %arg2: i32, %arg3: memref<8x128xf32, #tpu.memory_space<vmem>>, %arg4: memref<128x128xf32, #tpu.memory_space<vmem>>, %arg5: memref<1x128xf32, #tpu.memory_space<vmem>>, %arg6: memref<8x128xf32, #tpu.memory_space<vmem>>) attributes {dimension_semantics = [#tpu.dimension_semantics<parallel>, #tpu.dimension_semantics<parallel>, #tpu.dimension_semantics<arbitrary>], iteration_bounds = array<i64: 1, 1, 1>, scalar_prefetch = 0 : i64, scratch_operands = 0 : i64, tpu.core_type = #tpu.core_type<tc>, window_params = [{transform_indices = @transform_0, window_bounds = array<i64: 8, 128>}, {transform_indices = @transform_1, window_bounds = array<i64: 128, 128>}, {transform_indices = @transform_2, window_bounds = array<i64: 1, 128>}, {transform_indices = @transform_3, window_bounds = array<i64: 8, 128>}]} {
    %c0_i32 = arith.constant 0 : i32
    %0 = arith.cmpi eq, %arg2, %c0_i32 : i32
    %1 = arith.extui %0 : i1 to i32
    %c0_i32_0 = arith.constant 0 : i32
    %2 = arith.cmpi ne, %1, %c0_i32_0 : i32
    scf.if %2 {
      %cst_10 = arith.constant 0.000000e+00 : f32
      %12 = vector.broadcast %cst_10 : f32 to vector<8x128xf32>
      %c0_11 = arith.constant 0 : index
      %c0_12 = arith.constant 0 : index
      %13 = vector.load %arg6[%c0_11, %c0_12] : memref<8x128xf32, #tpu.memory_space<vmem>>, vector<8x128xf32>
      tpu.vector_store %arg6[%c0_11, %c0_12], %12 {strides = array<i32>} : memref<8x128xf32, #tpu.memory_space<vmem>>, vector<8x128xf32>,
    } else {
    }
    %c0 = arith.constant 0 : index
    %c0_1 = arith.constant 0 : index
    %3 = vector.load %arg6[%c0, %c0_1] : memref<8x128xf32, #tpu.memory_space<vmem>>, vector<8x128xf32>
    %c0_2 = arith.constant 0 : index
    %c0_3 = arith.constant 0 : index
    %4 = vector.load %arg3[%c0_2, %c0_3] : memref<8x128xf32, #tpu.memory_space<vmem>>, vector<8x128xf32>
    %c0_4 = arith.constant 0 : index
    %c0_5 = arith.constant 0 : index
    %5 = vector.load %arg4[%c0_4, %c0_5] : memref<128x128xf32, #tpu.memory_space<vmem>>, vector<128x128xf32>
    %cst = arith.constant dense<0.000000e+00> : vector<8x128xf32>
    %6 = tpu.matmul %4, %5, %cst {dimension_numbers = #tpu.dot_dimension_numbers<[1], [0], [0], [1], [0, 0, 1, 1], [], []>} : vector<8x128xf32>, vector<128x128xf32>, vector<8x128xf32> -> vector<8x128xf32>
    %7 = arith.addf %3, %6 : vector<8x128xf32>
    %c0_6 = arith.constant 0 : index
    %c0_7 = arith.constant 0 : index
    %8 = vector.load %arg6[%c0_6, %c0_7] : memref<8x128xf32, #tpu.memory_space<vmem>>, vector<8x128xf32>
    tpu.vector_store %arg6[%c0_6, %c0_7], %7 {strides = array<i32>} : memref<8x128xf32, #tpu.memory_space<vmem>>, vector<8x128xf32>,
    %c0_i32_8 = arith.constant 0 : i32
    %9 = arith.cmpi eq, %arg2, %c0_i32_8 : i32
    %10 = arith.extui %9 : i1 to i32
    %c0_i32_9 = arith.constant 0 : i32
    %11 = arith.cmpi ne, %10, %c0_i32_9 : i32
    scf.if %11 {
      %c0_10 = arith.constant 0 : index
      %c0_11 = arith.constant 0 : index
      %12 = vector.load %arg6[%c0_10, %c0_11] : memref<8x128xf32, #tpu.memory_space<vmem>>, vector<8x128xf32>
      %c0_12 = arith.constant 0 : index
      %c0_13 = arith.constant 0 : index
      %13 = vector.load %arg5[%c0_12, %c0_13] : memref<1x128xf32, #tpu.memory_space<vmem>>, vector<1x128xf32>
      %14 = vector.broadcast %13 : vector<1x128xf32> to vector<8x128xf32>
      %15 = arith.addf %12, %14 : vector<8x128xf32>
      %c0_14 = arith.constant 0 : index
      %c0_15 = arith.constant 0 : index
      %16 = vector.load %arg6[%c0_14, %c0_15] : memref<8x128xf32, #tpu.memory_space<vmem>>, vector<8x128xf32>
      tpu.vector_store %arg6[%c0_14, %c0_15], %15 {strides = array<i32>} : memref<8x128xf32, #tpu.memory_space<vmem>>, vector<8x128xf32>,
    } else {
    }
    return
  }
  func.func @transform_0(%arg0: i32, %arg1: i32, %arg2: i32) -> (i32, i32) {
    %c0_i32 = arith.constant 0 : i32
    return %arg0, %arg2 : i32, i32
  }
  func.func @transform_1(%arg0: i32, %arg1: i32, %arg2: i32) -> (i32, i32) {
    %c0_i32 = arith.constant 0 : i32
    return %arg2, %arg1 : i32, i32
  }
  func.func @transform_2(%arg0: i32, %arg1: i32, %arg2: i32) -> (i32, i32) {
    %c0_i32 = arith.constant 0 : i32
    %c0_i32_0 = arith.constant 0 : i32
    return %c0_i32, %arg1 : i32, i32
  }
  func.func @transform_3(%arg0: i32, %arg1: i32, %arg2: i32) -> (i32, i32) {
    %c0_i32 = arith.constant 0 : i32
    return %arg0, %arg1 : i32, i32
  }
}

</mosaic_0001>

<bundles_post_ra>
// kernel: tpu_custom_call.1
= control target key start
LH: loop header
LB: loop body
LE: loop exit
PB: predicated region body
PF: predicated region fallthrough
CT: control target
= control target key end

     0   :  { %8 = vsyncpa [#allocation3], 0  ;;  %s240_s0 = inlined_call_operand.hbm [shape: f32[8,128], index: 0, kind: input, shape index: {}]   ;;  %s241_s1 = inlined_call_operand.hbm [shape: f32[128,128], index: 1, kind: input, shape index: {}]   ;;  %s242_s2 = inlined_call_operand.vmem [shape: f32[1,128], index: 2, kind: input, shape index: {}]   ;;  %s243_s3 = inlined_call_operand.hbm [shape: f32[8,128], index: 3, kind: output, shape index: {}]  }
   0x1   :  { %9 = vsyncpa [#allocation6], 0 }
   0x2   :  { %10 = vsyncpa [#allocation4], 0  ;;  %s16_s14 = sshll.u32 %s240_s0, 4  ;;  %s203_s15 = smov [#allocation2]   ;;  %s17_s14 = int_to_ptr.hbm [resolvable:$true] %s16_s14 }
   0x3   :  { %s18_s16 = sshll.u32 %s203_s15, 4  ;;  %s26_s19 = sshll.u32 %s241_s1, 4  ;;  %s19_s16 = int_to_ptr.vmem [resolvable:$true] %s18_s16  ;;  %s27_s19 = int_to_ptr.hbm [resolvable:$true] %s26_s19 }
   0x4   :  { %21 = dma.hbm_to_vmem [thread:$0]  %s17_s14, 128, %s19_s16, [#allocation3]  }
   0x5   :  { %s204_s20 = smov [#allocation5]   ;;  %s205_s22 = smov 128  }
   0x6   :  { %s28_s21 = sshll.u32 %s204_s20, 4  ;;  %s206_s23 = smov 8   ;;  %s29_s21 = int_to_ptr.vmem [resolvable:$true] %s28_s21 }
   0x7   :  { %34 = dma.hbm_to_vmem [thread:$0]  %s27_s19, 2048, %s29_s21, [#allocation6], %s205_s22, %s205_s22, %s206_s23  }
   0x8   :  { %197 = dma.done.wait [#allocation3], 128  }
   0x9   :  { %198 = vsyncadd [#allocation3], 4294967168 }
   0xa   :  { %199 = dma.done.wait [#allocation6], 2048  }
   0xb   :  { %200 = vsyncadd [#allocation6], 4294965248  ;;  %v67_v0 = vld [vmem:[#allocation5 + $0x78] sm:$0xff]  ;;  %v66_v1 = vld [vmem:[#allocation5 + $0x70] sm:$0xff]  ;;  %s207_s24 = smov [#allocation7]   ;;  %s107_s28 = sshll.u32 %s243_s3, 4  ;;  %s108_s28 = int_to_ptr.hbm [resolvable:$true] %s107_s28 }
   0xc   :  { %68 = vmatpush.msra.mxu0 %v67_v0  ;;  %v65_v2 = vld [vmem:[#allocation5 + $0x68] sm:$0xff]  ;;  %v64_v3 = vld [vmem:[#allocation5 + $0x60] sm:$0xff]  ;;  %v63_v4 = vld [vmem:[#allocation5 + $0x58] sm:$0xff]  ;;  %s105_s25 = sshll.u32 %s207_s24, 4  ;;  %s106_s25 = int_to_ptr.vmem [resolvable:$true] %s105_s25 }
   0xd   :  { %v62_v5 = vld [vmem:[#allocation5 + $0x50] sm:$0xff]  ;;  %v61_v6 = vld [vmem:[#allocation5 + $0x48] sm:$0xff]  ;;  %v60_v7 = vld [vmem:[#allocation5 + $0x40] sm:$0xff] }
   0xe   :  { %69 = vmatpush.msra.mxu0 %v66_v1  ;;  %v59_v8 = vld [vmem:[#allocation5 + $0x38] sm:$0xff]  ;;  %v58_v9 = vld [vmem:[#allocation5 + $0x30] sm:$0xff]  ;;  %v57_v10 = vld [vmem:[#allocation5 + $0x28] sm:$0xff] }
   0xf   :  { %v56_v11 = vld [vmem:[#allocation5 + $0x20] sm:$0xff]  ;;  %v55_v12 = vld [vmem:[#allocation5 + $0x18] sm:$0xff]  ;;  %v54_v13 = vld [vmem:[#allocation5 + $0x10] sm:$0xff] }
  0x10   :  { %70 = vmatpush.msra.mxu0 %v65_v2  ;;  %v53_v14 = vld [vmem:[#allocation5 + $0x8] sm:$0xff]  ;;  %v52_v15 = vld [vmem:[#allocation5] sm:$0xff]  ;;  %v51_v16 = vld [vmem:[#allocation2] sm:$0xff] }
  0x11   :  { %v124_v17 = vld [vmem:[%s242_s2] ss:$0 sm:$0xff] }
  0x12   :  { %71 = vmatpush.msra.mxu0 %v64_v3 }
  0x14   :  { %72 = vmatpush.msra.mxu0 %v63_v4 }
  0x16   :  { %73 = vmatpush.msra.mxu0 %v62_v5 }
  0x18   :  { %74 = vmatpush.msra.mxu0 %v61_v6 }
  0x1a   :  { %75 = vmatpush.msra.mxu0 %v60_v7 }
  0x1c   :  { %76 = vmatpush.msra.mxu0 %v59_v8 }
  0x1e   :  { %77 = vmatpush.msra.mxu0 %v58_v9 }
  0x20   :  { %78 = vmatpush.msra.mxu0 %v57_v10 }
  0x22   :  { %79 = vmatpush.msra.mxu0 %v56_v11 }
  0x24   :  { %80 = vmatpush.msra.mxu0 %v55_v12 }
  0x26   :  { %81 = vmatpush.msra.mxu0 %v54_v13 }
  0x28   :  { %82 = vmatpush.msra.mxu0 %v53_v14 }
  0x2a   :  { %83 = vmatpush.msra.mxu0 %v52_v15 }
  0x2b   :  { %84 = vmatmul.f32.vlgmr.msra.gmra.mxu0 %v51_v16 }
  0xa8   :  { %v85_v18 = vpop.f32.mrf.mxu0 }
  0xa9   :  { %v98_v19 = vadd.f32 %v124_v17, %v85_v18 }
  0xab   :  { %99 = vst [vmem:[#allocation7] sm:$0xff] %v98_v19 }
  0xac   :  { %110 = dma.vmem_to_hbm [thread:$0]  %s106_s25, 128, %s108_s28, [#allocation4]  }
  0xad   :  { %201 = dma.done.wait [#allocation4], 128  }
  0xae   :  { %202 = vsyncadd [#allocation4], 4294967168 }
  0xaf   :  { %115 = vsyncpa [#allocation3], 1 }
  0xb0   :  { %116 = vsyncpa [#allocation6], 1 }
  0xb1   :  { %117 = vsyncpa [#allocation4], 1 }

</bundles_post_ra>
